<compile_context>
chip_gen: v6e
topology: v6e:2x2x1
jax: 0.10.0
libtpu: 0.0.40
codegen_flags: <defaults>
</compile_context>

<pallas_src>
import functools
import math

import jax
import jax.numpy as jnp
from jax.experimental import pallas as pl
from jax.experimental.pallas import tpu as pltpu


def _round_up(x, m):
    return ((x + m - 1) // m) * m


def _pad2(m, rows, cols, dtype=None):
    out = jnp.pad(m, ((0, rows - m.shape[0]), (0, cols - m.shape[1])))
    return out.astype(dtype) if dtype is not None else out


def _vmem_limit(block_bytes, scratch_bytes):
    """Computed VMEM budget: 2x double-buffered blocks + scratch + slack,
    clamped to <= 48 MiB so it stays legal on v7x (64 MiB physical VMEM)."""
    needed = 2 * int(sum(block_bytes)) + int(scratch_bytes) + (4 << 20)
    return int(min(max(needed, 16 << 20), 48 << 20))


# --------------------------------------------------------------------------
# Pass A: XW1 = X @ W1  (hoisted pre-matmul, row-tiled, weights resident)
# --------------------------------------------------------------------------
def _feat_matmul_kernel(x_ref, w_ref, o_ref):
    o_ref[...] = jnp.dot(x_ref[...], w_ref[...],
                         preferred_element_type=jnp.float32).astype(o_ref.dtype)


def _feat_matmul(x, w, *, tm):
    n, f = x.shape
    h = w.shape[1]
    itm = x.dtype.itemsize
    cost = pl.CostEstimate(
        flops=2 * n * f * h,
        transcendentals=0,
        bytes_accessed=(x.size + w.size + n * h) * itm,
    )
    vmem = _vmem_limit([tm * f * itm, f * h * itm, tm * h * itm], 0)
    return pl.pallas_call(
        _feat_matmul_kernel,
        out_shape=jax.ShapeDtypeStruct((n, h), x.dtype),
        grid_spec=pltpu.PrefetchScalarGridSpec(
            num_scalar_prefetch=0,
            grid=(n // tm,),
            in_specs=[
                pl.BlockSpec((tm, f), lambda i: (i, 0)),   # X row tile
                pl.BlockSpec((f, h), lambda i: (0, 0)),    # W1 resident
            ],
            out_specs=pl.BlockSpec((tm, h), lambda i: (i, 0)),
        ),
        compiler_params=pltpu.CompilerParams(
            dimension_semantics=("parallel",), vmem_limit_bytes=vmem),
        cost_estimate=cost,
    )(x, w)


# --------------------------------------------------------------------------
# Pass B: H1W2 = relu(Ahat @ XW1 + b1) @ W2
#   Ahat streamed as (TM, TK) tiles with an f32 accumulator over K;
#   XW1 is VMEM-resident and sliced in-kernel by the K index;
#   relu + bias + the layer-2 feature transform are fused into the epilogue.
# --------------------------------------------------------------------------
def _agg_relu_fused_kernel(a_ref, xw_ref, b_ref, w2_ref, o_ref, acc_ref, *, tk):
    k = pl.program_id(1)

    @pl.when(k == 0)
    def _():
        acc_ref[...] = jnp.zeros_like(acc_ref)

    start = pl.multiple_of(k * tk, tk)
    acc_ref[...] += jnp.dot(a_ref[...], xw_ref[pl.ds(start, tk), :],
                            preferred_element_type=jnp.float32)

    @pl.when(k == pl.num_programs(1) - 1)
    def _():
        h1 = jnp.maximum(acc_ref[...] + b_ref[...], 0.0)          # f32 (TM, H)
        o_ref[...] = jnp.dot(h1.astype(w2_ref.dtype), w2_ref[...],
                             preferred_element_type=jnp.float32).astype(o_ref.dtype)


def _agg_relu_fused(a, xw, b, w2, *, tm, tk):
    n = a.shape[0]
    h = xw.shape[1]
    o = w2.shape[1]
    itm = a.dtype.itemsize
    cost = pl.CostEstimate(
        flops=2 * n * n * h + 2 * n * h * o,
        transcendentals=0,
        bytes_accessed=(a.size + xw.size + w2.size + n * o) * itm + b.size * 4,
    )
    vmem = _vmem_limit(
        [tm * tk * itm,            # Ahat tile
         xw.size * itm,            # XW1 resident
         h * 4,                    # b1
         h * o * itm,              # W2 resident
         tm * o * itm],            # output tile
        tm * h * 4)                # f32 accumulator scratch
    return pl.pallas_call(
        functools.partial(_agg_relu_fused_kernel, tk=tk),
        out_shape=jax.ShapeDtypeStruct((n, o), a.dtype),
        grid_spec=pltpu.PrefetchScalarGridSpec(
            num_scalar_prefetch=0,
            grid=(n // tm, n // tk),
            in_specs=[
                pl.BlockSpec((tm, tk), lambda i, k: (i, k)),   # Ahat tile (streamed)
                pl.BlockSpec((n, h), lambda i, k: (0, 0)),     # XW1 VMEM-resident
                pl.BlockSpec((1, h), lambda i, k: (0, 0)),     # b1 resident
                pl.BlockSpec((h, o), lambda i, k: (0, 0)),     # W2 resident
            ],
            out_specs=pl.BlockSpec((tm, o), lambda i, k: (i, 0)),
            scratch_shapes=[pltpu.VMEM((tm, h), jnp.float32)],
        ),
        compiler_params=pltpu.CompilerParams(
            dimension_semantics=("parallel", "arbitrary"),
            vmem_limit_bytes=vmem),
        cost_estimate=cost,
    )(a, xw, b, w2)


# --------------------------------------------------------------------------
# Pass C: h = Ahat @ H1W2 + b2 ; out = h @ Wc + bc  (classifier in epilogue)
# --------------------------------------------------------------------------
def _agg_classify_kernel(a_ref, hw_ref, b_ref, wc_ref, bc_ref,
                         h_ref, out_ref, acc_ref, *, tk):
    k = pl.program_id(1)

    @pl.when(k == 0)
    def _():
        acc_ref[...] = jnp.zeros_like(acc_ref)

    start = pl.multiple_of(k * tk, tk)
    acc_ref[...] += jnp.dot(a_ref[...], hw_ref[pl.ds(start, tk), :],
                            preferred_element_type=jnp.float32)

    @pl.when(k == pl.num_programs(1) - 1)
    def _():
        h = acc_ref[...] + b_ref[...]                             # f32 (TM, O)
        h_ref[...] = h.astype(h_ref.dtype)
        out = jnp.dot(h.astype(wc_ref.dtype), wc_ref[...],
                      preferred_element_type=jnp.float32) + bc_ref[...]
        out_ref[...] = out.astype(out_ref.dtype)


def _agg_classify(a, hw, b, wc, bc, *, tm, tk):
    n = a.shape[0]
    o = hw.shape[1]
    itm = a.dtype.itemsize
    cost = pl.CostEstimate(
        flops=2 * n * n * o + 2 * n * o * o,
        transcendentals=0,
        bytes_accessed=(a.size + hw.size + wc.size) * itm
                       + (b.size + bc.size) * 4 + 2 * n * o * 4,
    )
    vmem = _vmem_limit(
        [tm * tk * itm,            # Ahat tile
         hw.size * itm,            # H1W2 resident
         o * 4, o * o * itm, o * 4,
         tm * o * 4, tm * o * 4],  # h / out tiles (f32)
        tm * o * 4)                # f32 accumulator scratch
    return pl.pallas_call(
        functools.partial(_agg_classify_kernel, tk=tk),
        out_shape=(
            jax.ShapeDtypeStruct((n, o), jnp.float32),     # h
            jax.ShapeDtypeStruct((n, o), jnp.float32),     # out
        ),
        grid_spec=pltpu.PrefetchScalarGridSpec(
            num_scalar_prefetch=0,
            grid=(n // tm, n // tk),
            in_specs=[
                pl.BlockSpec((tm, tk), lambda i, k: (i, k)),   # Ahat tile (streamed)
                pl.BlockSpec((n, o), lambda i, k: (0, 0)),     # H1W2 VMEM-resident
                pl.BlockSpec((1, o), lambda i, k: (0, 0)),     # b2 resident
                pl.BlockSpec((o, o), lambda i, k: (0, 0)),     # Wc resident
                pl.BlockSpec((1, o), lambda i, k: (0, 0)),     # bc resident
            ],
            out_specs=(
                pl.BlockSpec((tm, o), lambda i, k: (i, 0)),
                pl.BlockSpec((tm, o), lambda i, k: (i, 0)),
            ),
            scratch_shapes=[pltpu.VMEM((tm, o), jnp.float32)],
        ),
        compiler_params=pltpu.CompilerParams(
            dimension_semantics=("parallel", "arbitrary"),
            vmem_limit_bytes=vmem),
        cost_estimate=cost,
    )(a, hw, b, wc, bc)


# --------------------------------------------------------------------------
# Forward wrapper
# --------------------------------------------------------------------------
def gcl_forward(a_hat, x, w1, b1, w2, b2, wc, bc, *,
                tile_m=512, tile_k=512, compute_dtype=jnp.bfloat16):
    """GCL forward: (h, out) from dense normalized adjacency + parameters."""
    n, in_dim = x.shape
    hid = w1.shape[1]
    out_dim = w2.shape[1]

    f_pad = _round_up(in_dim, 128)
    h_pad = _round_up(hid, 128)
    o_pad = _round_up(out_dim, 128)

    # --- tile selection ---
    # Contraction tile: multiple of 128 (>= 256 preferred to fill the 256x256
    # MXU on v6e/v7x), clamped to the padded node count for small graphs.
    tk = min(max(tile_k, 128), _round_up(n, 128))
    tk = max(128, (tk // 128) * 128)
    n_pad = _round_up(n, tk)
    # Row tile: multiple of 8 dividing n_pad; keep grid[0] >= 2 when possible
    # so the v7x megacore splits the "parallel" row axis across both cores.
    tm = min(max(tile_m, 8), max(8, n_pad // 2))
    tm = max(8, (tm // 8) * 8)
    while n_pad % tm:
        tm -= 8

    # Zero-pad to lane-dense, (8,128)-tileable shapes; bf16 MXU operands.
    a_p = _pad2(a_hat, n_pad, n_pad, compute_dtype)
    x_p = _pad2(x, n_pad, f_pad, compute_dtype)
    w1_p = _pad2(w1, f_pad, h_pad, compute_dtype)
    w2_p = _pad2(w2, h_pad, o_pad, compute_dtype)
    wc_p = _pad2(wc, o_pad, o_pad, compute_dtype)
    b1_p = _pad2(b1, 1, h_pad, jnp.float32)
    b2_p = _pad2(b2, 1, o_pad, jnp.float32)
    bc_p = _pad2(bc, 1, o_pad, jnp.float32)

    # Pass A: XW1 = X @ W1 (hoisted pre-matmul; computed once per row).
    xw1 = _feat_matmul(x_p, w1_p, tm=tm)
    # Pass B: H1W2 = relu(Ahat @ XW1 + b1) @ W2   (layer-2 transform fused).
    h1w2 = _agg_relu_fused(a_p, xw1, b1_p, w2_p, tm=tm, tk=tk)
    # Pass C: h = Ahat @ H1W2 + b2 ; out = h @ Wc + bc (classifier fused).
    h_p, out_p = _agg_classify(a_p, h1w2, b2_p, wc_p, bc_p, tm=tm, tk=tk)

    # Padded rows/cols only ever receive bias terms; the slice removes them.
    return h_p[:n, :out_dim], out_p[:n, :out_dim]


def build_normalized_adjacency(edge_index, num_nodes):
    """Dense Ahat = D^{-1/2} (A + I) D^{-1/2} from edge_index [2, E] (plain-JAX glue)."""
    src, dst = edge_index[0], edge_index[1]
    a = jnp.zeros((num_nodes, num_nodes), jnp.float32)
    # GCNConv aggregates messages from source j into target i for edge (j -> i):
    a = a.at[dst, src].add(1.0)
    a = a + jnp.eye(num_nodes, dtype=jnp.float32)          # self loops
    deg = jnp.sum(a, axis=1)
    dinv = jnp.where(deg > 0, 1.0 / jnp.sqrt(deg), 0.0)
    return (dinv[:, None] * a) * dinv[None, :]


if __name__ == "__main__":
    # Small shapes consistent with the module (forward uses encoder + classifier).
    num_nodes = 200
    input_dim, hidden_dim, output_dim, proj_dim = 48, 64, 32, 16  # projector unused in forward

    key = jax.random.PRNGKey(0)
    k_x, k_w1, k_b1, k_w2, k_b2, k_wc, k_bc = jax.random.split(key, 7)

    # Node features
    x = jax.random.normal(k_x, (num_nodes, input_dim), jnp.float32)

    # Deterministic bidirectional ring graph, edge_index: [2, E]
    nodes = jnp.arange(num_nodes)
    src = jnp.concatenate([nodes, (nodes + 1) % num_nodes])
    dst = jnp.concatenate([(nodes + 1) % num_nodes, nodes])
    edge_index = jnp.stack([src, dst], axis=0)

    # Deterministic parameter init (Glorot-ish); biases as [1, dim] rows.
    def glorot(k, fan_in, fan_out):
        scale = jnp.sqrt(6.0 / (fan_in + fan_out))
        return jax.random.uniform(k, (fan_in, fan_out), jnp.float32, -scale, scale)

    w1 = glorot(k_w1, input_dim, hidden_dim)
    b1 = jax.random.normal(k_b1, (1, hidden_dim), jnp.float32) * 0.01
    w2 = glorot(k_w2, hidden_dim, output_dim)
    b2 = jax.random.normal(k_b2, (1, output_dim), jnp.float32) * 0.01
    # classifier (nn.Linear(output_dim, output_dim)): stored transposed as [in, out]
    wc = glorot(k_wc, output_dim, output_dim)
    bc = jax.random.normal(k_bc, (1, output_dim), jnp.float32) * 0.01

    a_hat = build_normalized_adjacency(edge_index, num_nodes)

    h, out = jax.jit(gcl_forward)(a_hat, x, w1, b1, w2, b2, wc, bc)
    jax.block_until_ready((h, out))

    # f32 reference of the same math.  Kernels use bf16 MXU operands with f32
    # accumulation, so tolerance is loosened accordingly.
    h1_ref = jnp.maximum(a_hat @ (x @ w1) + b1, 0.0)
    h_ref = a_hat @ (h1_ref @ w2) + b2
    out_ref = h_ref @ wc + bc
    assert h.shape == (num_nodes, output_dim), "h shape mismatch"
    assert out.shape == (num_nodes, output_dim), "out shape mismatch"
    assert jnp.allclose(h, h_ref, atol=5e-2, rtol=5e-2), "h mismatch"
    assert jnp.allclose(out, out_ref, atol=5e-2, rtol=5e-2), "out mismatch"

    print("KERNEL_OK")
</pallas_src>

<mosaic_0001>
module attributes {stable_mosaic.version = 11 : i64} {
  func.func @_agg_relu_fused_kernel(%arg0: i32, %arg1: i32, %arg2: memref<128x256xbf16, #tpu.memory_space<vmem>>, %arg3: memref<256x128xbf16, #tpu.memory_space<vmem>>, %arg4: memref<1x128xf32, #tpu.memory_space<vmem>>, %arg5: memref<128x128xbf16, #tpu.memory_space<vmem>>, %arg6: memref<128x128xbf16, #tpu.memory_space<vmem>>, %arg7: memref<128x128xf32, #tpu.memory_space<vmem>>) attributes {dimension_semantics = [#tpu.dimension_semantics<parallel>, #tpu.dimension_semantics<arbitrary>], iteration_bounds = array<i64: 2, 1>, scalar_prefetch = 0 : i64, scratch_operands = 1 : i64, tpu.core_type = #tpu.core_type<tc>, window_params = [{transform_indices = @transform_0, window_bounds = array<i64: 128, 256>}, {pipeline_mode = #tpu.pipeline_mode<synchronous>, transform_indices = @transform_1, window_bounds = array<i64: 256, 128>}, {pipeline_mode = #tpu.pipeline_mode<synchronous>, transform_indices = @transform_2, window_bounds = array<i64: 1, 128>}, {pipeline_mode = #tpu.pipeline_mode<synchronous>, transform_indices = @transform_3, window_bounds = array<i64: 128, 128>}, {transform_indices = @transform_4, window_bounds = array<i64: 128, 128>}]} {
    %c0_i32 = arith.constant 0 : i32
    %0 = arith.cmpi eq, %arg1, %c0_i32 : i32
    %1 = arith.extui %0 : i1 to i32
    %c0_i32_0 = arith.constant 0 : i32
    %2 = arith.cmpi ne, %1, %c0_i32_0 : i32
    scf.if %2 {
      %cst_9 = arith.constant 0.000000e+00 : f32
      %15 = vector.broadcast %cst_9 : f32 to vector<128x128xf32>
      %c0_10 = arith.constant 0 : index
      %c0_11 = arith.constant 0 : index
      %16 = vector.load %arg7[%c0_10, %c0_11] : memref<128x128xf32, #tpu.memory_space<vmem>>, vector<128x128xf32>
      tpu.vector_store %arg7[%c0_10, %c0_11], %15 {strides = array<i32>} : memref<128x128xf32, #tpu.memory_space<vmem>>, vector<128x128xf32>,
    } else {
    }
    %c256_i32 = arith.constant 256 : i32
    %3 = arith.muli %arg1, %c256_i32 : i32
    %4 = tpu.assume_multiple %3, 256 : i32
    %c0 = arith.constant 0 : index
    %c0_1 = arith.constant 0 : index
    %5 = vector.load %arg7[%c0, %c0_1] : memref<128x128xf32, #tpu.memory_space<vmem>>, vector<128x128xf32>
    %c0_2 = arith.constant 0 : index
    %c0_3 = arith.constant 0 : index
    %6 = vector.load %arg2[%c0_2, %c0_3] : memref<128x256xbf16, #tpu.memory_space<vmem>>, vector<128x256xbf16>
    %7 = arith.index_cast %4 : i32 to index
    %c0_4 = arith.constant 0 : index
    %8 = vector.load %arg3[%7, %c0_4] : memref<256x128xbf16, #tpu.memory_space<vmem>>, vector<256x128xbf16>
    %cst = arith.constant dense<0.000000e+00> : vector<128x128xf32>
    %9 = tpu.matmul %6, %8, %cst {dimension_numbers = #tpu.dot_dimension_numbers<[1], [0], [0], [1], [0, 0, 1, 1], [], []>} : vector<128x256xbf16>, vector<256x128xbf16>, vector<128x128xf32> -> vector<128x128xf32>
    %10 = arith.addf %5, %9 : vector<128x128xf32>
    %c0_5 = arith.constant 0 : index
    %c0_6 = arith.constant 0 : index
    %11 = vector.load %arg7[%c0_5, %c0_6] : memref<128x128xf32, #tpu.memory_space<vmem>>, vector<128x128xf32>
    tpu.vector_store %arg7[%c0_5, %c0_6], %10 {strides = array<i32>} : memref<128x128xf32, #tpu.memory_space<vmem>>, vector<128x128xf32>,
    %c0_i32_7 = arith.constant 0 : i32
    %12 = arith.cmpi eq, %arg1, %c0_i32_7 : i32
    %13 = arith.extui %12 : i1 to i32
    %c0_i32_8 = arith.constant 0 : i32
    %14 = arith.cmpi ne, %13, %c0_i32_8 : i32
    scf.if %14 {
      %c0_9 = arith.constant 0 : index
      %c0_10 = arith.constant 0 : index
      %15 = vector.load %arg7[%c0_9, %c0_10] : memref<128x128xf32, #tpu.memory_space<vmem>>, vector<128x128xf32>
      %c0_11 = arith.constant 0 : index
      %c0_12 = arith.constant 0 : index
      %16 = vector.load %arg4[%c0_11, %c0_12] : memref<1x128xf32, #tpu.memory_space<vmem>>, vector<1x128xf32>
      %17 = vector.broadcast %16 : vector<1x128xf32> to vector<128x128xf32>
      %18 = arith.addf %15, %17 : vector<128x128xf32>
      %cst_13 = arith.constant 0.000000e+00 : f32
      %19 = vector.broadcast %cst_13 : f32 to vector<128x128xf32>
      %20 = arith.maximumf %18, %19 : vector<128x128xf32>
      %21 = arith.truncf %20 : vector<128x128xf32> to vector<128x128xbf16>
      %c0_14 = arith.constant 0 : index
      %c0_15 = arith.constant 0 : index
      %22 = vector.load %arg5[%c0_14, %c0_15] : memref<128x128xbf16, #tpu.memory_space<vmem>>, vector<128x128xbf16>
      %cst_16 = arith.constant dense<0.000000e+00> : vector<128x128xf32>
      %23 = tpu.matmul %21, %22, %cst_16 {dimension_numbers = #tpu.dot_dimension_numbers<[1], [0], [0], [1], [0, 0, 1, 1], [], []>} : vector<128x128xbf16>, vector<128x128xbf16>, vector<128x128xf32> -> vector<128x128xf32>
      %24 = arith.truncf %23 : vector<128x128xf32> to vector<128x128xbf16>
      %c0_17 = arith.constant 0 : index
      %c0_18 = arith.constant 0 : index
      %25 = vector.load %arg6[%c0_17, %c0_18] : memref<128x128xbf16, #tpu.memory_space<vmem>>, vector<128x128xbf16>
      tpu.vector_store %arg6[%c0_17, %c0_18], %24 {strides = array<i32>} : memref<128x128xbf16, #tpu.memory_space<vmem>>, vector<128x128xbf16>,
    } else {
    }
    return
  }
  func.func @transform_0(%arg0: i32, %arg1: i32) -> (i32, i32) {
    %c0_i32 = arith.constant 0 : i32
    return %arg0, %arg1 : i32, i32
  }
  func.func @transform_1(%arg0: i32, %arg1: i32) -> (i32, i32) {
    %c0_i32 = arith.constant 0 : i32
    %c0_i32_0 = arith.constant 0 : i32
    %c0_i32_1 = arith.constant 0 : i32
    return %c0_i32, %c0_i32_0 : i32, i32
  }
  func.func @transform_2(%arg0: i32, %arg1: i32) -> (i32, i32) {
    %c0_i32 = arith.constant 0 : i32
    %c0_i32_0 = arith.constant 0 : i32
    %c0_i32_1 = arith.constant 0 : i32
    return %c0_i32, %c0_i32_0 : i32, i32
  }
  func.func @transform_3(%arg0: i32, %arg1: i32) -> (i32, i32) {
    %c0_i32 = arith.constant 0 : i32
    %c0_i32_0 = arith.constant 0 : i32
    %c0_i32_1 = arith.constant 0 : i32
    return %c0_i32, %c0_i32_0 : i32, i32
  }
  func.func @transform_4(%arg0: i32, %arg1: i32) -> (i32, i32) {
    %c0_i32 = arith.constant 0 : i32
    %c0_i32_0 = arith.constant 0 : i32
    return %arg0, %c0_i32 : i32, i32
  }
}

module attributes {stable_mosaic.version = 11 : i64} {
  func.func @_feat_matmul_kernel(%arg0: i32, %arg1: memref<128x128xbf16, #tpu.memory_space<vmem>>, %arg2: memref<128x128xbf16, #tpu.memory_space<vmem>>, %arg3: memref<128x128xbf16, #tpu.memory_space<vmem>>) attributes {dimension_semantics = [#tpu.dimension_semantics<parallel>], iteration_bounds = array<i64: 2>, scalar_prefetch = 0 : i64, scratch_operands = 0 : i64, tpu.core_type = #tpu.core_type<tc>, window_params = [{transform_indices = @transform_0, window_bounds = array<i64: 128, 128>}, {pipeline_mode = #tpu.pipeline_mode<synchronous>, transform_indices = @transform_1, window_bounds = array<i64: 128, 128>}, {transform_indices = @transform_2, window_bounds = array<i64: 128, 128>}]} {
    %c0 = arith.constant 0 : index
    %c0_0 = arith.constant 0 : index
    %0 = vector.load %arg1[%c0, %c0_0] : memref<128x128xbf16, #tpu.memory_space<vmem>>, vector<128x128xbf16>
    %c0_1 = arith.constant 0 : index
    %c0_2 = arith.constant 0 : index
    %1 = vector.load %arg2[%c0_1, %c0_2] : memref<128x128xbf16, #tpu.memory_space<vmem>>, vector<128x128xbf16>
    %cst = arith.constant dense<0.000000e+00> : vector<128x128xf32>
    %2 = tpu.matmul %0, %1, %cst {dimension_numbers = #tpu.dot_dimension_numbers<[1], [0], [0], [1], [0, 0, 1, 1], [], []>} : vector<128x128xbf16>, vector<128x128xbf16>, vector<128x128xf32> -> vector<128x128xf32>
    %3 = arith.truncf %2 : vector<128x128xf32> to vector<128x128xbf16>
    %c0_3 = arith.constant 0 : index
    %c0_4 = arith.constant 0 : index
    %4 = vector.load %arg3[%c0_3, %c0_4] : memref<128x128xbf16, #tpu.memory_space<vmem>>, vector<128x128xbf16>
    tpu.vector_store %arg3[%c0_3, %c0_4], %3 {strides = array<i32>} : memref<128x128xbf16, #tpu.memory_space<vmem>>, vector<128x128xbf16>,
    return
  }
  func.func @transform_0(%arg0: i32) -> (i32, i32) {
    %c0_i32 = arith.constant 0 : i32
    %c0_i32_0 = arith.constant 0 : i32
    return %arg0, %c0_i32 : i32, i32
  }
  func.func @transform_1(%arg0: i32) -> (i32, i32) {
    %c0_i32 = arith.constant 0 : i32
    %c0_i32_0 = arith.constant 0 : i32
    %c0_i32_1 = arith.constant 0 : i32
    return %c0_i32, %c0_i32_0 : i32, i32
  }
  func.func @transform_2(%arg0: i32) -> (i32, i32) {
    %c0_i32 = arith.constant 0 : i32
    %c0_i32_0 = arith.constant 0 : i32
    return %arg0, %c0_i32 : i32, i32
  }
}

module attributes {stable_mosaic.version = 11 : i64} {
  func.func @_agg_classify_kernel(%arg0: i32, %arg1: i32, %arg2: memref<128x256xbf16, #tpu.memory_space<vmem>>, %arg3: memref<256x128xbf16, #tpu.memory_space<vmem>>, %arg4: memref<1x128xf32, #tpu.memory_space<vmem>>, %arg5: memref<128x128xbf16, #tpu.memory_space<vmem>>, %arg6: memref<1x128xf32, #tpu.memory_space<vmem>>, %arg7: memref<128x128xf32, #tpu.memory_space<vmem>>, %arg8: memref<128x128xf32, #tpu.memory_space<vmem>>, %arg9: memref<128x128xf32, #tpu.memory_space<vmem>>) attributes {dimension_semantics = [#tpu.dimension_semantics<parallel>, #tpu.dimension_semantics<arbitrary>], iteration_bounds = array<i64: 2, 1>, scalar_prefetch = 0 : i64, scratch_operands = 1 : i64, tpu.core_type = #tpu.core_type<tc>, window_params = [{transform_indices = @transform_0, window_bounds = array<i64: 128, 256>}, {pipeline_mode = #tpu.pipeline_mode<synchronous>, transform_indices = @transform_1, window_bounds = array<i64: 256, 128>}, {pipeline_mode = #tpu.pipeline_mode<synchronous>, transform_indices = @transform_2, window_bounds = array<i64: 1, 128>}, {pipeline_mode = #tpu.pipeline_mode<synchronous>, transform_indices = @transform_3, window_bounds = array<i64: 128, 128>}, {pipeline_mode = #tpu.pipeline_mode<synchronous>, transform_indices = @transform_4, window_bounds = array<i64: 1, 128>}, {transform_indices = @transform_5, window_bounds = array<i64: 128, 128>}, {transform_indices = @transform_6, window_bounds = array<i64: 128, 128>}]} {
    %c0_i32 = arith.constant 0 : i32
    %0 = arith.cmpi eq, %arg1, %c0_i32 : i32
    %1 = arith.extui %0 : i1 to i32
    %c0_i32_0 = arith.constant 0 : i32
    %2 = arith.cmpi ne, %1, %c0_i32_0 : i32
    scf.if %2 {
      %cst_9 = arith.constant 0.000000e+00 : f32
      %15 = vector.broadcast %cst_9 : f32 to vector<128x128xf32>
      %c0_10 = arith.constant 0 : index
      %c0_11 = arith.constant 0 : index
      %16 = vector.load %arg9[%c0_10, %c0_11] : memref<128x128xf32, #tpu.memory_space<vmem>>, vector<128x128xf32>
      tpu.vector_store %arg9[%c0_10, %c0_11], %15 {strides = array<i32>} : memref<128x128xf32, #tpu.memory_space<vmem>>, vector<128x128xf32>,
    } else {
    }
    %c256_i32 = arith.constant 256 : i32
    %3 = arith.muli %arg1, %c256_i32 : i32
    %4 = tpu.assume_multiple %3, 256 : i32
    %c0 = arith.constant 0 : index
    %c0_1 = arith.constant 0 : index
    %5 = vector.load %arg9[%c0, %c0_1] : memref<128x128xf32, #tpu.memory_space<vmem>>, vector<128x128xf32>
    %c0_2 = arith.constant 0 : index
    %c0_3 = arith.constant 0 : index
    %6 = vector.load %arg2[%c0_2, %c0_3] : memref<128x256xbf16, #tpu.memory_space<vmem>>, vector<128x256xbf16>
    %7 = arith.index_cast %4 : i32 to index
    %c0_4 = arith.constant 0 : index
    %8 = vector.load %arg3[%7, %c0_4] : memref<256x128xbf16, #tpu.memory_space<vmem>>, vector<256x128xbf16>
    %cst = arith.constant dense<0.000000e+00> : vector<128x128xf32>
    %9 = tpu.matmul %6, %8, %cst {dimension_numbers = #tpu.dot_dimension_numbers<[1], [0], [0], [1], [0, 0, 1, 1], [], []>} : vector<128x256xbf16>, vector<256x128xbf16>, vector<128x128xf32> -> vector<128x128xf32>
    %10 = arith.addf %5, %9 : vector<128x128xf32>
    %c0_5 = arith.constant 0 : index
    %c0_6 = arith.constant 0 : index
    %11 = vector.load %arg9[%c0_5, %c0_6] : memref<128x128xf32, #tpu.memory_space<vmem>>, vector<128x128xf32>
    tpu.vector_store %arg9[%c0_5, %c0_6], %10 {strides = array<i32>} : memref<128x128xf32, #tpu.memory_space<vmem>>, vector<128x128xf32>,
    %c0_i32_7 = arith.constant 0 : i32
    %12 = arith.cmpi eq, %arg1, %c0_i32_7 : i32
    %13 = arith.extui %12 : i1 to i32
    %c0_i32_8 = arith.constant 0 : i32
    %14 = arith.cmpi ne, %13, %c0_i32_8 : i32
    scf.if %14 {
      %c0_9 = arith.constant 0 : index
      %c0_10 = arith.constant 0 : index
      %15 = vector.load %arg9[%c0_9, %c0_10] : memref<128x128xf32, #tpu.memory_space<vmem>>, vector<128x128xf32>
      %c0_11 = arith.constant 0 : index
      %c0_12 = arith.constant 0 : index
      %16 = vector.load %arg4[%c0_11, %c0_12] : memref<1x128xf32, #tpu.memory_space<vmem>>, vector<1x128xf32>
      %17 = vector.broadcast %16 : vector<1x128xf32> to vector<128x128xf32>
      %18 = arith.addf %15, %17 : vector<128x128xf32>
      %c0_13 = arith.constant 0 : index
      %c0_14 = arith.constant 0 : index
      %19 = vector.load %arg7[%c0_13, %c0_14] : memref<128x128xf32, #tpu.memory_space<vmem>>, vector<128x128xf32>
      tpu.vector_store %arg7[%c0_13, %c0_14], %18 {strides = array<i32>} : memref<128x128xf32, #tpu.memory_space<vmem>>, vector<128x128xf32>,
      %20 = arith.truncf %18 : vector<128x128xf32> to vector<128x128xbf16>
      %c0_15 = arith.constant 0 : index
      %c0_16 = arith.constant 0 : index
      %21 = vector.load %arg5[%c0_15, %c0_16] : memref<128x128xbf16, #tpu.memory_space<vmem>>, vector<128x128xbf16>
      %cst_17 = arith.constant dense<0.000000e+00> : vector<128x128xf32>
      %22 = tpu.matmul %20, %21, %cst_17 {dimension_numbers = #tpu.dot_dimension_numbers<[1], [0], [0], [1], [0, 0, 1, 1], [], []>} : vector<128x128xbf16>, vector<128x128xbf16>, vector<128x128xf32> -> vector<128x128xf32>
      %c0_18 = arith.constant 0 : index
      %c0_19 = arith.constant 0 : index
      %23 = vector.load %arg6[%c0_18, %c0_19] : memref<1x128xf32, #tpu.memory_space<vmem>>, vector<1x128xf32>
      %24 = vector.broadcast %23 : vector<1x128xf32> to vector<128x128xf32>
      %25 = arith.addf %22, %24 : vector<128x128xf32>
      %c0_20 = arith.constant 0 : index
      %c0_21 = arith.constant 0 : index
      %26 = vector.load %arg8[%c0_20, %c0_21] : memref<128x128xf32, #tpu.memory_space<vmem>>, vector<128x128xf32>
      tpu.vector_store %arg8[%c0_20, %c0_21], %25 {strides = array<i32>} : memref<128x128xf32, #tpu.memory_space<vmem>>, vector<128x128xf32>,
    } else {
    }
    return
  }
  func.func @transform_0(%arg0: i32, %arg1: i32) -> (i32, i32) {
    %c0_i32 = arith.constant 0 : i32
    return %arg0, %arg1 : i32, i32
  }
  func.func @transform_1(%arg0: i32, %arg1: i32) -> (i32, i32) {
    %c0_i32 = arith.constant 0 : i32
    %c0_i32_0 = arith.constant 0 : i32
    %c0_i32_1 = arith.constant 0 : i32
    return %c0_i32, %c0_i32_0 : i32, i32
  }
  func.func @transform_2(%arg0: i32, %arg1: i32) -> (i32, i32) {
    %c0_i32 = arith.constant 0 : i32
    %c0_i32_0 = arith.constant 0 : i32
    %c0_i32_1 = arith.constant 0 : i32
    return %c0_i32, %c0_i32_0 : i32, i32
  }
  func.func @transform_3(%arg0: i32, %arg1: i32) -> (i32, i32) {
    %c0_i32 = arith.constant 0 : i32
    %c0_i32_0 = arith.constant 0 : i32
    %c0_i32_1 = arith.constant 0 : i32
    return %c0_i32, %c0_i32_0 : i32, i32
  }
  func.func @transform_4(%arg0: i32, %arg1: i32) -> (i32, i32) {
    %c0_i32 = arith.constant 0 : i32
    %c0_i32_0 = arith.constant 0 : i32
    %c0_i32_1 = arith.constant 0 : i32
    return %c0_i32, %c0_i32_0 : i32, i32
  }
  func.func @transform_5(%arg0: i32, %arg1: i32) -> (i32, i32) {
    %c0_i32 = arith.constant 0 : i32
    %c0_i32_0 = arith.constant 0 : i32
    return %arg0, %c0_i32 : i32, i32
  }
  func.func @transform_6(%arg0: i32, %arg1: i32) -> (i32, i32) {
    %c0_i32 = arith.constant 0 : i32
    %c0_i32_0 = arith.constant 0 : i32
    return %arg0, %c0_i32 : i32, i32
  }
}

</mosaic_0001>

<bundles_post_ra>
// kernel: gcl_forward.3
= control target key start
LH: loop header
LB: loop body
LE: loop exit
PB: predicated region body
PF: predicated region fallthrough
CT: control target
= control target key end

     0   :  { %s726_s9 = smov 0   ;;  %s784_s0 = inlined_call_operand.vmem [shape: bf16[256,128], index: 0, kind: input, shape index: {}]   ;;  %s785_s1 = inlined_call_operand.vmem [shape: bf16[128,128], index: 1, kind: input, shape index: {}]   ;;  %s786_s2 = inlined_call_operand.vmem [shape: bf16[256,128], index: 2, kind: output, shape index: {}]  }
   0x1 LB: > { %s509_s10 = sadd.s32 4294967295, %s709_s9   ;;  %p513_p0 = scmp.ge.s32.totalorder %s709_s9, 1  ;;  %s709_s9 = sphi %s726_s9, %s12_s9  }
   0x2   : > { %p113_p1 = scmp.lt.s32.totalorder %s709_s9, 3 }
   0x4   : > { %p114_p2 = pnand %p513_p0, %p113_p1 }
   0x5   : > { %s514_s13 = sshll.u32 (!%p114_p2), %s509_s10, 4 }
   0x6   : > { %117 = sbr.rel (%p114_p2) target bundleno = 254 (0xfe), region = 28  ;;  %p136_p3 = scmp.lt.s32.totalorder (!%p114_p2), %s514_s13, 31 }
   0xb   : > { %v687_v0 = vld [vmem:[%s785_s1 + $0x38] sm:$0xff]   ;;  %v688_v1 = vld [vmem:[%s785_s1 + $0x30] sm:$0xff]   ;;  %s788_s13 = smov (!%p136_p3, %s514_s13), 31  ;;  %v689_v2 = vld [vmem:[%s785_s1 + $0x28] sm:$0xff]  }
   0xc   : > { %631 = vmatprep.subr.bf16.mxu0 %v687_v0  ;;  %663 = vmatprep.subr.bf16.mxu1 %v687_v0  ;;  %s515_s18 = sshll.u32 %s788_s13, 2  ;;  %v690_v3 = vld [vmem:[%s785_s1 + $0x20] sm:$0xff]   ;;  %v691_v6 = vld [vmem:[%s785_s1 + $0x18] sm:$0xff]   ;;  %v692_v7 = vld [vmem:[%s785_s1 + $0x10] sm:$0xff]  }
   0xd   : > { %632 = vmatpush3.bf16.msra.mxu0 %v687_v0  ;;  %671 = vmatpush3.bf16.msra.mxu1 %v687_v0  ;;  %s751_s21 = scalar_lea.vmem %s784_s0, %s515_s18  ;;  %v693_v8 = vld [vmem:[%s785_s1 + $0x8] sm:$0xff]   ;;  %v694_v9 = vld [vmem:[%s785_s1] sm:$0xff]   ;;  %s145_s6 = scalar_lea.vmem %s786_s2, %s515_s18 }
   0xe   : > { %633 = vmatprep.subr.bf16.mxu0 %v688_v1  ;;  %664 = vmatprep.subr.bf16.mxu1 %v688_v1  ;;  %v695_v4 = vld [vmem:[%s751_s21] sm:$0xff]   ;;  %v697_v10 = vld [vmem:[%s751_s21 + $0x8] sm:$0xff]   ;;  %v699_v12 = vld [vmem:[%s751_s21 + $0x10] sm:$0xff]  }
   0xf   : > { %v696_v5 = vld [vmem:[%s751_s21 + $0x20] sm:$0xff]   ;;  %647 = vmatprep.mubr.bf16.mxu0 %v695_v4  ;;  %v698_v11 = vld [vmem:[%s751_s21 + $0x28] sm:$0xff]   ;;  %v700_v13 = vld [vmem:[%s751_s21 + $0x30] sm:$0xff]  }
  0x10   : > { %655 = vmatprep.mubr.bf16.mxu1 %v696_v5  ;;  %v701_v14 = vld [vmem:[%s751_s21 + $0x18] sm:$0xff]  }
  0x11   : > { %634 = vmatpush3.bf16.msra.mxu0 %v688_v1  ;;  %672 = vmatpush3.bf16.msra.mxu1 %v688_v1  ;;  %v702_v15 = vld [vmem:[%s751_s21 + $0x38] sm:$0xff]  }
  0x12   : > { %635 = vmatprep.subr.bf16.mxu0 %v689_v2  ;;  %665 = vmatprep.subr.bf16.mxu1 %v689_v2 }
  0x15   : > { %636 = vmatpush3.bf16.msra.mxu0 %v689_v2  ;;  %673 = vmatpush3.bf16.msra.mxu1 %v689_v2 }
  0x16   : > { %637 = vmatprep.subr.bf16.mxu0 %v690_v3  ;;  %666 = vmatprep.subr.bf16.mxu1 %v690_v3 }
  0x19   : > { %638 = vmatpush3.bf16.msra.mxu0 %v690_v3  ;;  %674 = vmatpush3.bf16.msra.mxu1 %v690_v3 }
  0x1a   : > { %639 = vmatprep.subr.bf16.mxu0 %v691_v6  ;;  %667 = vmatprep.subr.bf16.mxu1 %v691_v6 }
  0x1d   : > { %640 = vmatpush3.bf16.msra.mxu0 %v691_v6  ;;  %675 = vmatpush3.bf16.msra.mxu1 %v691_v6 }
  0x1e   : > { %641 = vmatprep.subr.bf16.mxu0 %v692_v7  ;;  %668 = vmatprep.subr.bf16.mxu1 %v692_v7 }
  0x21   : > { %642 = vmatpush3.bf16.msra.mxu0 %v692_v7  ;;  %676 = vmatpush3.bf16.msra.mxu1 %v692_v7 }
  0x22   : > { %643 = vmatprep.subr.bf16.mxu0 %v693_v8  ;;  %669 = vmatprep.subr.bf16.mxu1 %v693_v8 }
  0x25   : > { %644 = vmatpush3.bf16.msra.mxu0 %v693_v8  ;;  %677 = vmatpush3.bf16.msra.mxu1 %v693_v8 }
  0x26   : > { %645 = vmatprep.subr.bf16.mxu0 %v694_v9  ;;  %670 = vmatprep.subr.bf16.mxu1 %v694_v9 }
  0x29   : > { %646 = vmatpush3.bf16.msra.mxu0 %v694_v9  ;;  %678 = vmatpush3.bf16.msra.mxu1 %v694_v9 }
  0x2c   : > { %648 = vmatmul.mubr.bf16.vlgmr.msra.gmra.mxu0 %v697_v10  ;;  %656 = vmatmul.mubr.bf16.vlgmr.msra.gmra.mxu1 %v698_v11 }
  0x2d   : > { %651 = vmatprep.mubr.bf16.mxu0 %v699_v12  ;;  %659 = vmatprep.mubr.bf16.mxu1 %v700_v13 }
  0x34   : > { %652 = vmatmul.mubr.bf16.gmra.mxu0 %v701_v14  ;;  %660 = vmatmul.mubr.bf16.gmra.mxu1 %v702_v15 }
  0xec   : > { %v649_v16 = vpop.f32.mrf.mxu0  ;;  %v657_v17 = vpop.f32.mrf.mxu1 }
  0xee   : > { %v310_v18 = vpop.f32.mrf.mxu0  ;;  %v342_v19 = vpop.f32.mrf.mxu1 }
  0xf0   : > { %v650_v20 = vpop.f32.mrf.mxu0  ;;  %v658_v21 = vpop.f32.mrf.mxu1 }
  0xf1   : > { %v576_v22 = vpack.c.bf16 %v650_v20, %v649_v16  ;;  %v596_v23 = vpack.c.bf16 %v658_v21, %v657_v17 }
  0xf2   : > { %v313_v24 = vpop.f32.mrf.mxu0  ;;  %v345_v25 = vpop.f32.mrf.mxu1 }
  0xf3   : > { %608 = vst [vmem:[%s145_s6 + $0x8] sm:$0xff] %v576_v22   ;;  %612 = vst [vmem:[%s145_s6 + $0x28] sm:$0xff] %v596_v23   ;;  %v571_v26 = vpack.c.bf16 %v313_v24, %v310_v18  ;;  %v591_v27 = vpack.c.bf16 %v345_v25, %v342_v19 }
  0xf4   : > { %v653_v28 = vpop.f32.mrf.mxu0  ;;  %v661_v29 = vpop.f32.mrf.mxu1 }
  0xf5   : > { %572 = vst [vmem:[%s145_s6] sm:$0xff] %v571_v26   ;;  %611 = vst [vmem:[%s145_s6 + $0x20] sm:$0xff] %v591_v27  }
  0xf6   : > { %v326_v30 = vpop.f32.mrf.mxu0  ;;  %v358_v31 = vpop.f32.mrf.mxu1 }
  0xf8   : > { %v654_v32 = vpop.f32.mrf.mxu0  ;;  %v662_v33 = vpop.f32.mrf.mxu1 }
  0xf9   : > { %v586_v34 = vpack.c.bf16 %v654_v32, %v653_v28  ;;  %v606_v35 = vpack.c.bf16 %v662_v33, %v661_v29 }
  0xfa   : > { %v329_v36 = vpop.f32.mrf.mxu0  ;;  %v361_v37 = vpop.f32.mrf.mxu1 }
  0xfb   : > { %610 = vst [vmem:[%s145_s6 + $0x18] sm:$0xff] %v586_v34   ;;  %614 = vst [vmem:[%s145_s6 + $0x38] sm:$0xff] %v606_v35   ;;  %v581_v38 = vpack.c.bf16 %v329_v36, %v326_v30  ;;  %v601_v39 = vpack.c.bf16 %v361_v37, %v358_v31 }
  0xfd   : > { %609 = vst [vmem:[%s145_s6 + $0x10] sm:$0xff] %v581_v38   ;;  %613 = vst [vmem:[%s145_s6 + $0x30] sm:$0xff] %v601_v39  }
  0xfe PF: > { %s12_s9 = sadd.s32 1, %s709_s9  }
  0xff   : > { %p9_p4 = scmp.ge.s32.totalorder %s12_s9, 4  }
 0x101   :  { %11 = sbr.rel (!%p9_p4) target bundleno = 1 (0x1), region = 58 }

// kernel: gcl_forward.4
= control target key start
LH: loop header
LB: loop body
LE: loop exit
PB: predicated region body
PF: predicated region fallthrough
CT: control target
= control target key end

     0   :  { %s1373_s15 = smov 0   ;;  %s1375_s16 = smov 0   ;;  %s1521_s0 = inlined_call_operand.vmem [shape: bf16[256,256], index: 0, kind: input, shape index: {}]   ;;  %s1522_s1 = inlined_call_operand.vmem [shape: bf16[256,128], index: 1, kind: input, shape index: {}]   ;;  %s1523_s2 = inlined_call_operand.vmem [shape: f32[1,128], index: 2, kind: input, shape index: {}]   ;;  %s1524_s3 = inlined_call_operand.vmem [shape: bf16[128,128], index: 3, kind: input, shape index: {}]   ;;  %s1525_s4 = inlined_call_operand.vmem [shape: bf16[256,128], index: 4, kind: output, shape index: {}]  }
   0x1   :  { %s1377_s17 = smov 0  }
   0x2 LB: > { %s26_s18 = sadd.s32 1, %s1342_s16  ;;  %p1011_p0 = scmp.ge.s32.totalorder %s1346_s17, 1  ;;  %s1346_s17 = sphi %s1377_s17, %s14_s17   ;;  %s1342_s16 = sphi %s1375_s16, %s1527_s16   ;;  %s1338_s15 = sphi %s1373_s15, %s1526_s15  }
   0x3   : > { %p28_p1 = scmp.ge.s32.totalorder %s26_s18, 2  ;;  %p183_p2 = scmp.lt.s32.totalorder %s1346_s17, 3 }
   0x5   : > { %s1529_s18 = smov (%p28_p1, %s26_s18), 0  ;;  %p184_p3 = pnand %p1011_p0, %p183_p2 }
   0x6   : > { %s1012_s21 = sshll.u32 (!%p184_p3), %s1338_s15, 4 }
   0x7   : > { %187 = sbr.rel (%p184_p3) target bundleno = 510 (0x1fe), region = 36  ;;  %p216_p4 = scmp.lt.s32.totalorder (!%p184_p3), %s1012_s21, 31 }
   0xc   : > { %v1276_v0 = vld [vmem:[%s1522_s1 + $0x78] sm:$0xff]   ;;  %v1278_v2 = vld [vmem:[%s1522_s1 + $0x70] sm:$0xff]   ;;  %v1280_v4 = vld [vmem:[%s1522_s1 + $0x68] sm:$0xff]   ;;  %s1531_s21 = smov (!%p216_p4, %s1012_s21), 31 }
   0xd   : > { %v1277_v1 = vld [vmem:[%s1522_s1 + $0x38] sm:$0xff]   ;;  %1140 = vmatprep.subr.bf16.mxu0 %v1276_v0  ;;  %v1279_v3 = vld [vmem:[%s1522_s1 + $0x30] sm:$0xff]   ;;  %v1281_v5 = vld [vmem:[%s1522_s1 + $0x28] sm:$0xff]   ;;  %s1076_s10 = sshll.u32 %s1531_s21, 3  ;;  %s1016_s30 = sshll.u32 %s1531_s21, 2 }
   0xe   : > { %1141 = vmatpush3.bf16.msra.mxu0 %v1277_v1  ;;  %v1282_v6 = vld [vmem:[%s1522_s1 + $0x60] sm:$0xff]   ;;  %v1284_v8 = vld [vmem:[%s1522_s1 + $0x58] sm:$0xff]   ;;  %s1424_s15 = scalar_lea.vmem %s1521_s0, %s1076_s10  ;;  %v1286_v10 = vld [vmem:[%s1522_s1 + $0x50] sm:$0xff]   ;;  %s230_s7 = scalar_lea.vmem %s1525_s4, %s1016_s30 }
   0xf   : > { %1142 = vmatprep.subr.bf16.mxu0 %v1278_v2  ;;  %v1283_v7 = vld [vmem:[%s1522_s1 + $0x20] sm:$0xff]   ;;  %v1285_v9 = vld [vmem:[%s1522_s1 + $0x18] sm:$0xff]   ;;  %v1287_v12 = vld [vmem:[%s1522_s1 + $0x10] sm:$0xff]  }
  0x10   : > { %v1294_v11 = vld [vmem:[%s1424_s15 + $0x4] ss:$8 sps:$4 sm:$0xff]   ;;  %v1316_v17 = vld [vmem:[%s1524_s3 + $0x38] sm:$0xff]   ;;  %v1292_v18 = vld [vmem:[%s1424_s15] ss:$8 sps:$4 sm:$0xff]  }
  0x11   : > { %530 = vmatprep.mubr.bf16.mxu0 %v1294_v11  ;;  %v1288_v13 = vld [vmem:[%s1522_s1 + $0x48] sm:$0xff]   ;;  %v1290_v15 = vld [vmem:[%s1522_s1 + $0x40] sm:$0xff]   ;;  %v1317_v19 = vld [vmem:[%s1524_s3 + $0x30] sm:$0xff]   ;;  %1220 = vmatprep.subr.bf16.mxu1 %v1316_v17 }
  0x12   : > { %1143 = vmatpush3.bf16.msra.mxu0 %v1279_v3  ;;  %v1289_v14 = vld [vmem:[%s1522_s1 + $0x8] sm:$0xff]   ;;  %v1291_v16 = vld [vmem:[%s1522_s1] sm:$0xff]   ;;  %v1295_v20 = vld [vmem:[%s1424_s15 + $0x14] ss:$8 sps:$4 sm:$0xff]   ;;  %1221 = vmatpush3.bf16.msra.mxu1 %v1316_v17 }
  0x13   : > { %1144 = vmatprep.subr.bf16.mxu0 %v1280_v4  ;;  %v1318_v21 = vld [vmem:[%s1524_s3 + $0x28] sm:$0xff]   ;;  %1222 = vmatprep.subr.bf16.mxu1 %v1317_v19  ;;  %v1297_v22 = vld [vmem:[%s1424_s15 + $0x10] ss:$8 sps:$4 sm:$0xff]   ;;  %v1301_v25 = vld [vmem:[%s1424_s15 + $0x34] ss:$8 sps:$4 sm:$0xff]  }
  0x14   : > { %v1298_v23 = vld [vmem:[%s1424_s15 + $0x24] ss:$8 sps:$4 sm:$0xff]   ;;  %v1300_v24 = vld [vmem:[%s1424_s15 + $0x20] ss:$8 sps:$4 sm:$0xff]   ;;  %v1303_v26 = vld [vmem:[%s1424_s15 + $0x30] ss:$8 sps:$4 sm:$0xff]  }
  0x15   : > { %v1304_v27 = vld [vmem:[%s1424_s15 + $0x44] ss:$8 sps:$4 sm:$0xff]   ;;  %v1306_v28 = vld [vmem:[%s1424_s15 + $0x40] ss:$8 sps:$4 sm:$0xff]   ;;  %v1307_v29 = vld [vmem:[%s1424_s15 + $0x54] ss:$8 sps:$4 sm:$0xff]  }
  0x16   : > { %1145 = vmatpush3.bf16.msra.mxu0 %v1281_v5  ;;  %1223 = vmatpush3.bf16.msra.mxu1 %v1317_v19  ;;  %v1309_v30 = vld [vmem:[%s1424_s15 + $0x50] ss:$8 sps:$4 sm:$0xff]   ;;  %v1310_v31 = vld [vmem:[%s1424_s15 + $0x64] ss:$8 sps:$4 sm:$0xff]   ;;  %v1312_v32 = vld [vmem:[%s1424_s15 + $0x60] ss:$8 sps:$4 sm:$0xff]  }
  0x17   : > { %1146 = vmatprep.subr.bf16.mxu0 %v1282_v6  ;;  %1224 = vmatprep.subr.bf16.mxu1 %v1318_v21  ;;  %v1313_v33 = vld [vmem:[%s1424_s15 + $0x74] ss:$8 sps:$4 sm:$0xff]   ;;  %v1315_v34 = vld [vmem:[%s1424_s15 + $0x70] ss:$8 sps:$4 sm:$0xff]   ;;  %v1319_v35 = vld [vmem:[%s1524_s3 + $0x20] sm:$0xff]  }
  0x18   : > { %v1320_v36 = vld [vmem:[%s1524_s3 + $0x18] sm:$0xff]   ;;  %v1321_v37 = vld [vmem:[%s1524_s3 + $0x10] sm:$0xff]   ;;  %v1322_v38 = vld [vmem:[%s1524_s3 + $0x8] sm:$0xff]  }
  0x19   : > { %v1323_v39 = vld [vmem:[%s1524_s3] sm:$0xff]  }
  0x1a   : > { %1147 = vmatpush3.bf16.msra.mxu0 %v1283_v7  ;;  %1225 = vmatpush3.bf16.msra.mxu1 %v1318_v21  ;;  %v1490_v44 = vld [vmem:[%s1523_s2] ss:$0 sm:$0xff] }
  0x1b   : > { %1148 = vmatprep.subr.bf16.mxu0 %v1284_v8  ;;  %1226 = vmatprep.subr.bf16.mxu1 %v1319_v35 }
  0x1e   : > { %1149 = vmatpush3.bf16.msra.mxu0 %v1285_v9  ;;  %1227 = vmatpush3.bf16.msra.mxu1 %v1319_v35 }
  0x1f   : > { %1150 = vmatprep.subr.bf16.mxu0 %v1286_v10  ;;  %1228 = vmatprep.subr.bf16.mxu1 %v1320_v36 }
  0x22   : > { %1151 = vmatpush3.bf16.msra.mxu0 %v1287_v12  ;;  %1229 = vmatpush3.bf16.msra.mxu1 %v1320_v36 }
  0x23   : > { %1152 = vmatprep.subr.bf16.mxu0 %v1288_v13  ;;  %1230 = vmatprep.subr.bf16.mxu1 %v1321_v37 }
  0x26   : > { %1153 = vmatpush3.bf16.msra.mxu0 %v1289_v14  ;;  %1231 = vmatpush3.bf16.msra.mxu1 %v1321_v37 }
  0x27   : > { %1154 = vmatprep.subr.bf16.mxu0 %v1290_v15  ;;  %1232 = vmatprep.subr.bf16.mxu1 %v1322_v38 }
  0x2a   : > { %1155 = vmatpush3.bf16.msra.mxu0 %v1291_v16  ;;  %1233 = vmatpush3.bf16.msra.mxu1 %v1322_v38 }
  0x2b   : > { %1234 = vmatprep.subr.bf16.mxu1 %v1323_v39 }
  0x2d   : > { %531 = vmatmul.mubr.bf16.vlgmr.msra.gmra.mxu0 %v1292_v18 }
  0x2e   : > { %538 = vmatprep.mubr.bf16.mxu0 %v1295_v20  ;;  %1235 = vmatpush3.bf16.msra.mxu1 %v1323_v39 }
  0x35   : > { %539 = vmatmul.mubr.bf16.gmra.mxu0 %v1297_v22 }
  0x36   : > { %546 = vmatprep.mubr.bf16.mxu0 %v1298_v23 }
  0x3d   : > { %547 = vmatmul.mubr.bf16.gmra.mxu0 %v1300_v24 }
  0x3e   : > { %554 = vmatprep.mubr.bf16.mxu0 %v1301_v25 }
  0x45   : > { %555 = vmatmul.mubr.bf16.gmra.mxu0 %v1303_v26 }
  0x46   : > { %562 = vmatprep.mubr.bf16.mxu0 %v1304_v27 }
  0x4d   : > { %563 = vmatmul.mubr.bf16.gmra.mxu0 %v1306_v28 }
  0x4e   : > { %570 = vmatprep.mubr.bf16.mxu0 %v1307_v29 }
  0x55   : > { %571 = vmatmul.mubr.bf16.gmra.mxu0 %v1309_v30 }
  0x56   : > { %578 = vmatprep.mubr.bf16.mxu0 %v1310_v31 }
  0x5d   : > { %579 = vmatmul.mubr.bf16.gmra.mxu0 %v1312_v32 }
  0x5e   : > { %586 = vmatprep.mubr.bf16.mxu0 %v1313_v33 }
  0x65   : > { %587 = vmatmul.mubr.bf16.gmra.mxu0 %v1315_v34 }
  0xed   : > { %v1156_v40 = vpop.f32.mrf.mxu0 }
  0xef   : > { %v1157_v41 = vpop.f32.mrf.mxu0 }
  0xf0   : > { %v1158_v42 = vadd.f32 %v1157_v41, %v1156_v40 }
  0xf1   : > { %v1159_v43 = vpop.f32.mrf.mxu0 }
  0xf2   : > { %v653_v47 = vadd.f32 %v1158_v42, %v1490_v44 }
  0xf3   : > { %v1160_v45 = vpop.f32.mrf.mxu0 }
  0xf4   : > { %v1161_v46 = vadd.f32 %v1160_v45, %v1159_v43  ;;  %v669_v52 = vmax.f32 %v653_v47, 0.0 }
  0xf5   : > { %v1162_v48 = vpop.f32.mrf.mxu0 }
  0xf6   : > { %v654_v49 = vadd.f32 %v1161_v46, %v1490_v44 }
  0xf7   : > { %v1163_v50 = vpop.f32.mrf.mxu0 }
  0xf8   : > { %v1164_v51 = vadd.f32 %v1163_v50, %v1162_v48  ;;  %v670_v53 = vmax.f32 %v654_v49, 0.0 }
  0xf9   : > { %v1165_v54 = vpop.f32.mrf.mxu0 }
  0xfa   : > { %v685_v55 = vpack.c.bf16 %v670_v53, %v669_v52  ;;  %v655_v57 = vadd.f32 %v1164_v51, %v1490_v44 }
  0xfb   : > { %v1166_v56 = vpop.f32.mrf.mxu0 }
  0xfc   : > { %v1167_v58 = vadd.f32 %v1166_v56, %v1165_v54  ;;  %1236 = vmatprep.mubr.bf16.mxu1 %v685_v55  ;;  %v671_v62 = vmax.f32 %v655_v57, 0.0 }
  0xfd   : > { %v1168_v59 = vpop.f32.mrf.mxu0 }
  0xfe   : > { %v656_v60 = vadd.f32 %v1167_v58, %v1490_v44 }
  0xff   : > { %v1169_v61 = vpop.f32.mrf.mxu0 }
 0x100   : > { %v672_v63 = vmax.f32 %v656_v60, 0.0  ;;  %v1170_v0 = vadd.f32 %v1169_v61, %v1168_v59 }
 0x101   : > { %v1171_v1 = vpop.f32.mrf.mxu0 }
 0x102   : > { %v686_v2 = vpack.c.bf16 %v672_v63, %v671_v62  ;;  %v657_v4 = vadd.f32 %v1170_v0, %v1490_v44 }
 0x103   : > { %v1172_v3 = vpop.f32.mrf.mxu0 }
 0x104   : > { %v1173_v5 = vadd.f32 %v1172_v3, %v1171_v1  ;;  %1237 = vmatmul.mubr.bf16.vlgmr.msra.gmra.mxu1 %v686_v2  ;;  %v673_v9 = vmax.f32 %v657_v4, 0.0 }
 0x105   : > { %v1174_v6 = vpop.f32.mrf.mxu0 }
 0x106   : > { %v658_v7 = vadd.f32 %v1173_v5, %v1490_v44 }
 0x107   : > { %v1175_v8 = vpop.f32.mrf.mxu0 }
 0x108   : > { %v674_v10 = vmax.f32 %v658_v7, 0.0  ;;  %v1176_v11 = vadd.f32 %v1175_v8, %v1174_v6 }
 0x109   : > { %v1177_v12 = vpop.f32.mrf.mxu0 }
 0x10a   : > { %v687_v13 = vpack.c.bf16 %v674_v10, %v673_v9  ;;  %v659_v15 = vadd.f32 %v1176_v11, %v1490_v44 }
 0x10b   : > { %v1178_v14 = vpop.f32.mrf.mxu0 }
 0x10c   : > { %v1179_v16 = vadd.f32 %v1178_v14, %v1177_v12  ;;  %1240 = vmatprep.mubr.bf16.mxu1 %v687_v13  ;;  %v675_v20 = vmax.f32 %v659_v15, 0.0 }
 0x10d   : > { %v1180_v17 = vpop.f32.mrf.mxu0 }
 0x10e   : > { %v660_v18 = vadd.f32 %v1179_v16, %v1490_v44 }
 0x10f   : > { %v1181_v19 = vpop.f32.mrf.mxu0 }
 0x110   : > { %v676_v21 = vmax.f32 %v660_v18, 0.0  ;;  %v1182_v22 = vadd.f32 %v1181_v19, %v1180_v17 }
 0x111   : > { %v1183_v23 = vpop.f32.mrf.mxu0 }
 0x112   : > { %v688_v24 = vpack.c.bf16 %v676_v21, %v675_v20  ;;  %v661_v26 = vadd.f32 %v1182_v22, %v1490_v44 }
 0x113   : > { %v1184_v25 = vpop.f32.mrf.mxu0 }
 0x114   : > { %v1185_v27 = vadd.f32 %v1184_v25, %v1183_v23  ;;  %1241 = vmatmul.mubr.bf16.gmra.mxu1 %v688_v24  ;;  %v677_v31 = vmax.f32 %v661_v26, 0.0 }
 0x115   : > { %v1186_v28 = vpop.f32.mrf.mxu0 }
 0x116   : > { %v662_v29 = vadd.f32 %v1185_v27, %v1490_v44 }
 0x117   : > { %v1187_v30 = vpop.f32.mrf.mxu0 }
 0x118   : > { %v678_v32 = vmax.f32 %v662_v29, 0.0  ;;  %v1188_v33 = vadd.f32 %v1187_v30, %v1186_v28 }
 0x119   : > { %v1189_v34 = vpop.f32.mrf.mxu0 }
 0x11a   : > { %v689_v35 = vpack.c.bf16 %v678_v32, %v677_v31  ;;  %v663_v37 = vadd.f32 %v1188_v33, %v1490_v44 }
 0x11b   : > { %v1190_v36 = vpop.f32.mrf.mxu0 }
 0x11c   : > { %v1191_v38 = vadd.f32 %v1190_v36, %v1189_v34  ;;  %1244 = vmatprep.mubr.bf16.mxu1 %v689_v35  ;;  %v679_v42 = vmax.f32 %v663_v37, 0.0 }
 0x11d   : > { %v1192_v39 = vpop.f32.mrf.mxu0 }
 0x11e   : > { %v664_v40 = vadd.f32 %v1191_v38, %v1490_v44 }
 0x11f   : > { %v1193_v41 = vpop.f32.mrf.mxu0 }
 0x120   : > { %v680_v43 = vmax.f32 %v664_v40, 0.0  ;;  %v1194_v45 = vadd.f32 %v1193_v41, %v1192_v39 }
 0x121   : > { %v1195_v46 = vpop.f32.mrf.mxu0 }
 0x122   : > { %v690_v47 = vpack.c.bf16 %v680_v43, %v679_v42  ;;  %v665_v49 = vadd.f32 %v1194_v45, %v1490_v44 }
 0x123   : > { %v1196_v48 = vpop.f32.mrf.mxu0 }
 0x124   : > { %v1197_v50 = vadd.f32 %v1196_v48, %v1195_v46  ;;  %1245 = vmatmul.mubr.bf16.gmra.mxu1 %v690_v47  ;;  %v681_v54 = vmax.f32 %v665_v49, 0.0 }
 0x125   : > { %v1198_v51 = vpop.f32.mrf.mxu0 }
 0x126   : > { %v666_v52 = vadd.f32 %v1197_v50, %v1490_v44 }
 0x127   : > { %v1199_v53 = vpop.f32.mrf.mxu0 }
 0x128   : > { %v682_v55 = vmax.f32 %v666_v52, 0.0  ;;  %v1200_v56 = vadd.f32 %v1199_v53, %v1198_v51 }
 0x129   : > { %v1201_v57 = vpop.f32.mrf.mxu0 }
 0x12a   : > { %v691_v58 = vpack.c.bf16 %v682_v55, %v681_v54  ;;  %v667_v60 = vadd.f32 %v1200_v56, %v1490_v44 }
 0x12b   : > { %v1202_v59 = vpop.f32.mrf.mxu0 }
 0x12c   : > { %v1203_v61 = vadd.f32 %v1202_v59, %v1201_v57  ;;  %1248 = vmatprep.mubr.bf16.mxu1 %v691_v58  ;;  %v683_v63 = vmax.f32 %v667_v60, 0.0 }
 0x12e   : > { %v668_v62 = vadd.f32 %v1203_v61, %v1490_v44 }
 0x130   : > { %v684_v0 = vmax.f32 %v668_v62, 0.0 }
 0x132   : > { %v692_v1 = vpack.c.bf16 %v684_v0, %v683_v63 }
 0x134   : > { %1249 = vmatmul.mubr.bf16.gmra.mxu1 %v692_v1 }
 0x1c4   : > { %v1238_v2 = vpop.f32.mrf.mxu1 }
 0x1c6   : > { %v791_v3 = vpop.f32.mrf.mxu1 }
 0x1c8   : > { %v1239_v4 = vpop.f32.mrf.mxu1 }
 0x1c9   : > { %v1101_v5 = vpack.c.bf16 %v1239_v4, %v1238_v2 }
 0x1ca   : > { %v794_v6 = vpop.f32.mrf.mxu1 }
 0x1cb   : > { %1133 = vst [vmem:[%s230_s7 + $0x8] sm:$0xff] %v1101_v5   ;;  %v1096_v7 = vpack.c.bf16 %v794_v6, %v791_v3 }
 0x1cd   : > { %1097 = vst [vmem:[%s230_s7] sm:$0xff] %v1096_v7  }
 0x1d4   : > { %v1242_v8 = vpop.f32.mrf.mxu1 }
 0x1d6   : > { %v807_v9 = vpop.f32.mrf.mxu1 }
 0x1d8   : > { %v1243_v44 = vpop.f32.mrf.mxu1 }
 0x1d9   : > { %v1111_v10 = vpack.c.bf16 %v1243_v44, %v1242_v8 }
 0x1da   : > { %v810_v11 = vpop.f32.mrf.mxu1 }
 0x1db   : > { %1135 = vst [vmem:[%s230_s7 + $0x18] sm:$0xff] %v1111_v10   ;;  %v1106_v12 = vpack.c.bf16 %v810_v11, %v807_v9 }
 0x1dd   : > { %1134 = vst [vmem:[%s230_s7 + $0x10] sm:$0xff] %v1106_v12  }
 0x1e4   : > { %v1246_v13 = vpop.f32.mrf.mxu1 }
 0x1e6   : > { %v823_v14 = vpop.f32.mrf.mxu1 }
 0x1e8   : > { %v1247_v15 = vpop.f32.mrf.mxu1 }
 0x1e9   : > { %v1121_v16 = vpack.c.bf16 %v1247_v15, %v1246_v13 }
 0x1ea   : > { %v826_v17 = vpop.f32.mrf.mxu1 }
 0x1eb   : > { %1137 = vst [vmem:[%s230_s7 + $0x28] sm:$0xff] %v1121_v16   ;;  %v1116_v18 = vpack.c.bf16 %v826_v17, %v823_v14 }
 0x1ed   : > { %1136 = vst [vmem:[%s230_s7 + $0x20] sm:$0xff] %v1116_v18  }
 0x1f4   : > { %v1250_v19 = vpop.f32.mrf.mxu1 }
 0x1f6   : > { %v839_v20 = vpop.f32.mrf.mxu1 }
 0x1f8   : > { %v1251_v21 = vpop.f32.mrf.mxu1 }
 0x1f9   : > { %v1131_v22 = vpack.c.bf16 %v1251_v21, %v1250_v19 }
 0x1fa   : > { %v842_v23 = vpop.f32.mrf.mxu1 }
 0x1fb   : > { %1139 = vst [vmem:[%s230_s7 + $0x38] sm:$0xff] %v1131_v22   ;;  %v1126_v24 = vpack.c.bf16 %v842_v23, %v839_v20 }
 0x1fd   : > { %1138 = vst [vmem:[%s230_s7 + $0x30] sm:$0xff] %v1126_v24  }
 0x1fe PF: > { %s14_s17 = sadd.s32 1, %s1346_s17   ;;  %s1526_s15 = smov %s1342_s16 }
 0x1ff   : > { %p11_p5 = scmp.ge.s32.totalorder %s14_s17, 4   ;;  %s1527_s16 = smov %s1529_s18 }
 0x201   :  { %13 = sbr.rel (!%p11_p5) target bundleno = 2 (0x2), region = 75 }

// kernel: gcl_forward.5
= control target key start
LH: loop header
LB: loop body
LE: loop exit
PB: predicated region body
PF: predicated region fallthrough
CT: control target
= control target key end

     0   :  { %s1352_s21 = smov 0   ;;  %s1354_s22 = smov 0   ;;  %s1543_s0 = inlined_call_operand.vmem [shape: bf16[256,256], index: 0, kind: input, shape index: {}]   ;;  %s1544_s1 = inlined_call_operand.vmem [shape: bf16[256,128], index: 1, kind: input, shape index: {}]   ;;  %s1545_s2 = inlined_call_operand.vmem [shape: f32[1,128], index: 2, kind: input, shape index: {}]   ;;  %s1546_s3 = inlined_call_operand.vmem [shape: bf16[128,128], index: 3, kind: input, shape index: {}]   ;;  %s1547_s4 = inlined_call_operand.vmem [shape: f32[1,128], index: 4, kind: input, shape index: {}]   ;;  %s1548_s5 = inlined_call_operand.vmem [shape: f32[256,128], index: 5, kind: output, shape index: {0}]   ;;  %s1549_s6 = inlined_call_operand.vmem [shape: f32[256,128], index: 6, kind: output, shape index: {1}]  }
   0x1   :  { %s1356_s23 = smov 0  }
   0x2 LB: > { %s29_s24 = sadd.s32 1, %s1311_s22  ;;  %p1056_p0 = scmp.ge.s32.totalorder %s1315_s23, 1  ;;  %s1315_s23 = sphi %s1356_s23, %s17_s23   ;;  %s1311_s22 = sphi %s1354_s22, %s1551_s22   ;;  %s1307_s21 = sphi %s1352_s21, %s1550_s21  }
   0x3   : > { %p31_p1 = scmp.ge.s32.totalorder %s29_s24, 2  ;;  %p236_p2 = scmp.lt.s32.totalorder %s1315_s23, 3 }
   0x5   : > { %s1553_s24 = smov (%p31_p1, %s29_s24), 0  ;;  %p237_p3 = pnand %p1056_p0, %p236_p2 }
   0x6   : > { %s1057_s27 = sshll.u32 (!%p237_p3), %s1307_s21, 4 }
   0x7   : > { %240 = sbr.rel (%p237_p3) target bundleno = 508 (0x1fc), region = 40  ;;  %p278_p4 = scmp.lt.s32.totalorder (!%p237_p3), %s1057_s27, 31 }
   0xc   : > { %v1245_v0 = vld [vmem:[%s1544_s1 + $0x78] sm:$0xff]   ;;  %v1247_v2 = vld [vmem:[%s1544_s1 + $0x70] sm:$0xff]   ;;  %v1249_v4 = vld [vmem:[%s1544_s1 + $0x68] sm:$0xff]   ;;  %s1555_s27 = smov (!%p278_p4, %s1057_s27), 31 }
   0xd   : > { %v1246_v1 = vld [vmem:[%s1544_s1 + $0x38] sm:$0xff]   ;;  %1109 = vmatprep.subr.bf16.mxu0 %v1245_v0  ;;  %v1248_v3 = vld [vmem:[%s1544_s1 + $0x30] sm:$0xff]   ;;  %v1250_v5 = vld [vmem:[%s1544_s1 + $0x28] sm:$0xff]   ;;  %s1394_s18 = sshll.u32 %s1555_s27, 3 }
   0xe   : > { %1110 = vmatpush3.bf16.msra.mxu0 %v1246_v1  ;;  %v1251_v6 = vld [vmem:[%s1544_s1 + $0x60] sm:$0xff]   ;;  %v1253_v8 = vld [vmem:[%s1544_s1 + $0x58] sm:$0xff]   ;;  %s1403_s26 = scalar_lea.vmem %s1543_s0, %s1394_s18  ;;  %v1255_v10 = vld [vmem:[%s1544_s1 + $0x50] sm:$0xff]   ;;  %s1475_s17 = scalar_lea.vmem %s1548_s5, %s1394_s18 }
   0xf   : > { %1111 = vmatprep.subr.bf16.mxu0 %v1247_v2  ;;  %v1252_v7 = vld [vmem:[%s1544_s1 + $0x20] sm:$0xff]   ;;  %v1254_v9 = vld [vmem:[%s1544_s1 + $0x18] sm:$0xff]   ;;  %v1256_v12 = vld [vmem:[%s1544_s1 + $0x10] sm:$0xff]   ;;  %s1516_s28 = scalar_lea.vmem %s1549_s6, %s1394_s18 }
  0x10   : > { %v1263_v11 = vld [vmem:[%s1403_s26 + $0x4] ss:$8 sps:$4 sm:$0xff]   ;;  %v1285_v17 = vld [vmem:[%s1546_s3 + $0x38] sm:$0xff]   ;;  %v1261_v18 = vld [vmem:[%s1403_s26] ss:$8 sps:$4 sm:$0xff]  }
  0x11   : > { %598 = vmatprep.mubr.bf16.mxu0 %v1263_v11  ;;  %v1257_v13 = vld [vmem:[%s1544_s1 + $0x48] sm:$0xff]   ;;  %v1259_v15 = vld [vmem:[%s1544_s1 + $0x40] sm:$0xff]   ;;  %v1286_v19 = vld [vmem:[%s1546_s3 + $0x30] sm:$0xff]   ;;  %1189 = vmatprep.subr.bf16.mxu1 %v1285_v17 }
  0x12   : > { %1112 = vmatpush3.bf16.msra.mxu0 %v1248_v3  ;;  %v1258_v14 = vld [vmem:[%s1544_s1 + $0x8] sm:$0xff]   ;;  %v1260_v16 = vld [vmem:[%s1544_s1] sm:$0xff]   ;;  %v1264_v20 = vld [vmem:[%s1403_s26 + $0x14] ss:$8 sps:$4 sm:$0xff]   ;;  %1190 = vmatpush3.bf16.msra.mxu1 %v1285_v17 }
  0x13   : > { %1113 = vmatprep.subr.bf16.mxu0 %v1249_v4  ;;  %v1287_v21 = vld [vmem:[%s1546_s3 + $0x28] sm:$0xff]   ;;  %1191 = vmatprep.subr.bf16.mxu1 %v1286_v19  ;;  %v1266_v22 = vld [vmem:[%s1403_s26 + $0x10] ss:$8 sps:$4 sm:$0xff]   ;;  %v1270_v25 = vld [vmem:[%s1403_s26 + $0x34] ss:$8 sps:$4 sm:$0xff]  }
  0x14   : > { %v1267_v23 = vld [vmem:[%s1403_s26 + $0x24] ss:$8 sps:$4 sm:$0xff]   ;;  %v1269_v24 = vld [vmem:[%s1403_s26 + $0x20] ss:$8 sps:$4 sm:$0xff]   ;;  %v1272_v26 = vld [vmem:[%s1403_s26 + $0x30] ss:$8 sps:$4 sm:$0xff]  }
  0x15   : > { %v1273_v27 = vld [vmem:[%s1403_s26 + $0x44] ss:$8 sps:$4 sm:$0xff]   ;;  %v1275_v28 = vld [vmem:[%s1403_s26 + $0x40] ss:$8 sps:$4 sm:$0xff]   ;;  %v1276_v29 = vld [vmem:[%s1403_s26 + $0x54] ss:$8 sps:$4 sm:$0xff]  }
  0x16   : > { %1114 = vmatpush3.bf16.msra.mxu0 %v1250_v5  ;;  %1192 = vmatpush3.bf16.msra.mxu1 %v1286_v19  ;;  %v1278_v30 = vld [vmem:[%s1403_s26 + $0x50] ss:$8 sps:$4 sm:$0xff]   ;;  %v1279_v31 = vld [vmem:[%s1403_s26 + $0x64] ss:$8 sps:$4 sm:$0xff]   ;;  %v1281_v32 = vld [vmem:[%s1403_s26 + $0x60] ss:$8 sps:$4 sm:$0xff]  }
  0x17   : > { %1115 = vmatprep.subr.bf16.mxu0 %v1251_v6  ;;  %1193 = vmatprep.subr.bf16.mxu1 %v1287_v21  ;;  %v1282_v33 = vld [vmem:[%s1403_s26 + $0x74] ss:$8 sps:$4 sm:$0xff]   ;;  %v1284_v34 = vld [vmem:[%s1403_s26 + $0x70] ss:$8 sps:$4 sm:$0xff]   ;;  %v1288_v35 = vld [vmem:[%s1546_s3 + $0x20] sm:$0xff]  }
  0x18   : > { %v1289_v36 = vld [vmem:[%s1546_s3 + $0x18] sm:$0xff]   ;;  %v1290_v37 = vld [vmem:[%s1546_s3 + $0x10] sm:$0xff]   ;;  %v1291_v38 = vld [vmem:[%s1546_s3 + $0x8] sm:$0xff]  }
  0x19   : > { %v1292_v39 = vld [vmem:[%s1546_s3] sm:$0xff]  }
  0x1a   : > { %1116 = vmatpush3.bf16.msra.mxu0 %v1252_v7  ;;  %1194 = vmatpush3.bf16.msra.mxu1 %v1287_v21  ;;  %v1469_v42 = vld [vmem:[%s1545_s2] ss:$0 sm:$0xff] }
  0x1b   : > { %1117 = vmatprep.subr.bf16.mxu0 %v1253_v8  ;;  %1195 = vmatprep.subr.bf16.mxu1 %v1288_v35 }
  0x1e   : > { %1118 = vmatpush3.bf16.msra.mxu0 %v1254_v9  ;;  %1196 = vmatpush3.bf16.msra.mxu1 %v1288_v35 }
  0x1f   : > { %1119 = vmatprep.subr.bf16.mxu0 %v1255_v10  ;;  %1197 = vmatprep.subr.bf16.mxu1 %v1289_v36 }
  0x22   : > { %1120 = vmatpush3.bf16.msra.mxu0 %v1256_v12  ;;  %1198 = vmatpush3.bf16.msra.mxu1 %v1289_v36 }
  0x23   : > { %1121 = vmatprep.subr.bf16.mxu0 %v1257_v13  ;;  %1199 = vmatprep.subr.bf16.mxu1 %v1290_v37 }
  0x26   : > { %1122 = vmatpush3.bf16.msra.mxu0 %v1258_v14  ;;  %1200 = vmatpush3.bf16.msra.mxu1 %v1290_v37 }
  0x27   : > { %1123 = vmatprep.subr.bf16.mxu0 %v1259_v15  ;;  %1201 = vmatprep.subr.bf16.mxu1 %v1291_v38 }
  0x2a   : > { %1124 = vmatpush3.bf16.msra.mxu0 %v1260_v16  ;;  %1202 = vmatpush3.bf16.msra.mxu1 %v1291_v38 }
  0x2b   : > { %1203 = vmatprep.subr.bf16.mxu1 %v1292_v39 }
  0x2d   : > { %599 = vmatmul.mubr.bf16.vlgmr.msra.gmra.mxu0 %v1261_v18 }
  0x2e   : > { %606 = vmatprep.mubr.bf16.mxu0 %v1264_v20  ;;  %1204 = vmatpush3.bf16.msra.mxu1 %v1292_v39 }
  0x35   : > { %607 = vmatmul.mubr.bf16.gmra.mxu0 %v1266_v22 }
  0x36   : > { %614 = vmatprep.mubr.bf16.mxu0 %v1267_v23 }
  0x3d   : > { %615 = vmatmul.mubr.bf16.gmra.mxu0 %v1269_v24 }
  0x3e   : > { %622 = vmatprep.mubr.bf16.mxu0 %v1270_v25 }
  0x45   : > { %623 = vmatmul.mubr.bf16.gmra.mxu0 %v1272_v26 }
  0x46   : > { %630 = vmatprep.mubr.bf16.mxu0 %v1273_v27 }
  0x4d   : > { %631 = vmatmul.mubr.bf16.gmra.mxu0 %v1275_v28 }
  0x4e   : > { %638 = vmatprep.mubr.bf16.mxu0 %v1276_v29 }
  0x55   : > { %639 = vmatmul.mubr.bf16.gmra.mxu0 %v1278_v30 }
  0x56   : > { %646 = vmatprep.mubr.bf16.mxu0 %v1279_v31 }
  0x5d   : > { %647 = vmatmul.mubr.bf16.gmra.mxu0 %v1281_v32 }
  0x5e   : > { %654 = vmatprep.mubr.bf16.mxu0 %v1282_v33 }
  0x65   : > { %655 = vmatmul.mubr.bf16.gmra.mxu0 %v1284_v34 }
  0xed   : > { %v1125_v40 = vpop.f32.mrf.mxu0 }
  0xef   : > { %v1126_v41 = vpop.f32.mrf.mxu0 }
  0xf0   : > { %v1127_v43 = vadd.f32 %v1126_v41, %v1125_v40 }
  0xf1   : > { %v1128_v44 = vpop.f32.mrf.mxu0 }
  0xf2   : > { %v721_v45 = vadd.f32 %v1127_v43, %v1469_v42 }
  0xf3   : > { %v1129_v46 = vpop.f32.mrf.mxu0 }
  0xf4   : > { %v1130_v47 = vadd.f32 %v1129_v46, %v1128_v44  ;;  %737 = vst [vmem:[%s1475_s17] sm:$0xff] %v721_v45 }
  0xf5   : > { %v1131_v48 = vpop.f32.mrf.mxu0 }
  0xf6   : > { %v722_v49 = vadd.f32 %v1130_v47, %v1469_v42 }
  0xf7   : > { %v1132_v50 = vpop.f32.mrf.mxu0 }
  0xf8   : > { %v1133_v51 = vadd.f32 %v1132_v50, %v1131_v48  ;;  %738 = vst [vmem:[%s1475_s17 + $0x8] sm:$0xff] %v722_v49  ;;  %v753_v52 = vpack.c.bf16 %v722_v49, %v721_v45  ;;  %v1097_v50 = vld [vmem:[%s1547_s4] ss:$0 sm:$0xff] }
  0xf9   : > { %v1134_v53 = vpop.f32.mrf.mxu0 }
  0xfa   : > { %v723_v54 = vadd.f32 %v1133_v51, %v1469_v42  ;;  %1205 = vmatprep.mubr.bf16.mxu1 %v753_v52 }
  0xfb   : > { %v1135_v55 = vpop.f32.mrf.mxu0 }
  0xfc   : > { %739 = vst [vmem:[%s1475_s17 + $0x10] sm:$0xff] %v723_v54  ;;  %v1136_v56 = vadd.f32 %v1135_v55, %v1134_v53 }
  0xfd   : > { %v1137_v57 = vpop.f32.mrf.mxu0 }
  0xfe   : > { %v724_v58 = vadd.f32 %v1136_v56, %v1469_v42 }
  0xff   : > { %v1138_v59 = vpop.f32.mrf.mxu0 }
 0x100   : > { %740 = vst [vmem:[%s1475_s17 + $0x18] sm:$0xff] %v724_v58  ;;  %v1139_v60 = vadd.f32 %v1138_v59, %v1137_v57  ;;  %v754_v61 = vpack.c.bf16 %v724_v58, %v723_v54 }
 0x101   : > { %v1140_v62 = vpop.f32.mrf.mxu0 }
 0x102   : > { %v725_v63 = vadd.f32 %v1139_v60, %v1469_v42  ;;  %1206 = vmatmul.mubr.bf16.vlgmr.msra.gmra.mxu1 %v754_v61 }
 0x103   : > { %v1141_v0 = vpop.f32.mrf.mxu0 }
 0x104   : > { %741 = vst [vmem:[%s1475_s17 + $0x20] sm:$0xff] %v725_v63  ;;  %v1142_v1 = vadd.f32 %v1141_v0, %v1140_v62 }
 0x105   : > { %v1143_v2 = vpop.f32.mrf.mxu0 }
 0x106   : > { %v726_v3 = vadd.f32 %v1142_v1, %v1469_v42 }
 0x107   : > { %v1144_v4 = vpop.f32.mrf.mxu0 }
 0x108   : > { %742 = vst [vmem:[%s1475_s17 + $0x28] sm:$0xff] %v726_v3  ;;  %v1145_v5 = vadd.f32 %v1144_v4, %v1143_v2  ;;  %v755_v6 = vpack.c.bf16 %v726_v3, %v725_v63 }
 0x109   : > { %v1146_v7 = vpop.f32.mrf.mxu0 }
 0x10a   : > { %v727_v8 = vadd.f32 %v1145_v5, %v1469_v42  ;;  %1209 = vmatprep.mubr.bf16.mxu1 %v755_v6 }
 0x10b   : > { %v1147_v9 = vpop.f32.mrf.mxu0 }
 0x10c   : > { %743 = vst [vmem:[%s1475_s17 + $0x30] sm:$0xff] %v727_v8  ;;  %v1148_v10 = vadd.f32 %v1147_v9, %v1146_v7 }
 0x10d   : > { %v1149_v11 = vpop.f32.mrf.mxu0 }
 0x10e   : > { %v728_v12 = vadd.f32 %v1148_v10, %v1469_v42 }
 0x10f   : > { %v1150_v13 = vpop.f32.mrf.mxu0 }
 0x110   : > { %744 = vst [vmem:[%s1475_s17 + $0x38] sm:$0xff] %v728_v12  ;;  %v1151_v14 = vadd.f32 %v1150_v13, %v1149_v11  ;;  %v756_v15 = vpack.c.bf16 %v728_v12, %v727_v8 }
 0x111   : > { %v1152_v16 = vpop.f32.mrf.mxu0 }
 0x112   : > { %v729_v17 = vadd.f32 %v1151_v14, %v1469_v42  ;;  %1210 = vmatmul.mubr.bf16.gmra.mxu1 %v756_v15 }
 0x113   : > { %v1153_v18 = vpop.f32.mrf.mxu0 }
 0x114   : > { %745 = vst [vmem:[%s1475_s17 + $0x40] sm:$0xff] %v729_v17  ;;  %v1154_v19 = vadd.f32 %v1153_v18, %v1152_v16 }
 0x115   : > { %v1155_v20 = vpop.f32.mrf.mxu0 }
 0x116   : > { %v730_v21 = vadd.f32 %v1154_v19, %v1469_v42 }
 0x117   : > { %v1156_v22 = vpop.f32.mrf.mxu0 }
 0x118   : > { %746 = vst [vmem:[%s1475_s17 + $0x48] sm:$0xff] %v730_v21  ;;  %v1157_v23 = vadd.f32 %v1156_v22, %v1155_v20  ;;  %v757_v24 = vpack.c.bf16 %v730_v21, %v729_v17 }
 0x119   : > { %v1158_v25 = vpop.f32.mrf.mxu0 }
 0x11a   : > { %v731_v26 = vadd.f32 %v1157_v23, %v1469_v42  ;;  %1213 = vmatprep.mubr.bf16.mxu1 %v757_v24 }
 0x11b   : > { %v1159_v27 = vpop.f32.mrf.mxu0 }
 0x11c   : > { %747 = vst [vmem:[%s1475_s17 + $0x50] sm:$0xff] %v731_v26  ;;  %v1160_v28 = vadd.f32 %v1159_v27, %v1158_v25 }
 0x11d   : > { %v1161_v29 = vpop.f32.mrf.mxu0 }
 0x11e   : > { %v732_v30 = vadd.f32 %v1160_v28, %v1469_v42 }
 0x11f   : > { %v1162_v31 = vpop.f32.mrf.mxu0 }
 0x120   : > { %748 = vst [vmem:[%s1475_s17 + $0x58] sm:$0xff] %v732_v30  ;;  %v1163_v32 = vadd.f32 %v1162_v31, %v1161_v29  ;;  %v758_v33 = vpack.c.bf16 %v732_v30, %v731_v26 }
 0x121   : > { %v1164_v34 = vpop.f32.mrf.mxu0 }
 0x122   : > { %v733_v35 = vadd.f32 %v1163_v32, %v1469_v42  ;;  %1214 = vmatmul.mubr.bf16.gmra.mxu1 %v758_v33 }
 0x123   : > { %v1165_v36 = vpop.f32.mrf.mxu0 }
 0x124   : > { %749 = vst [vmem:[%s1475_s17 + $0x60] sm:$0xff] %v733_v35  ;;  %v1166_v37 = vadd.f32 %v1165_v36, %v1164_v34 }
 0x125   : > { %v1167_v38 = vpop.f32.mrf.mxu0 }
 0x126   : > { %v734_v39 = vadd.f32 %v1166_v37, %v1469_v42 }
 0x127   : > { %v1168_v40 = vpop.f32.mrf.mxu0 }
 0x128   : > { %750 = vst [vmem:[%s1475_s17 + $0x68] sm:$0xff] %v734_v39  ;;  %v1169_v41 = vadd.f32 %v1168_v40, %v1167_v38  ;;  %v759_v43 = vpack.c.bf16 %v734_v39, %v733_v35 }
 0x129   : > { %v1170_v44 = vpop.f32.mrf.mxu0 }
 0x12a   : > { %v735_v45 = vadd.f32 %v1169_v41, %v1469_v42  ;;  %1217 = vmatprep.mubr.bf16.mxu1 %v759_v43 }
 0x12b   : > { %v1171_v46 = vpop.f32.mrf.mxu0 }
 0x12c   : > { %751 = vst [vmem:[%s1475_s17 + $0x70] sm:$0xff] %v735_v45  ;;  %v1172_v47 = vadd.f32 %v1171_v46, %v1170_v44 }
 0x12e   : > { %v736_v48 = vadd.f32 %v1172_v47, %v1469_v42 }
 0x130   : > { %752 = vst [vmem:[%s1475_s17 + $0x78] sm:$0xff] %v736_v48  ;;  %v760_v49 = vpack.c.bf16 %v736_v48, %v735_v45 }
 0x132   : > { %1218 = vmatmul.mubr.bf16.gmra.mxu1 %v760_v49 }
 0x1c2   : > { %v1207_v51 = vpop.f32.mrf.mxu1 }
 0x1c3   : > { %v875_v52 = vadd.f32 %v1207_v51, %v1097_v50 }
 0x1c4   : > { %v866_v42 = vpop.f32.mrf.mxu1 }
 0x1c5   : > { %931 = vst [vmem:[%s1516_s28 + $0x10] sm:$0xff] %v875_v52  ;;  %v867_v53 = vadd.f32 %v1097_v50, %v866_v42 }
 0x1c6   : > { %v1208_v54 = vpop.f32.mrf.mxu1 }
 0x1c7   : > { %929 = vst [vmem:[%s1516_s28] sm:$0xff] %v867_v53  ;;  %v878_v55 = vadd.f32 %v1208_v54, %v1097_v50 }
 0x1c8   : > { %v869_v56 = vpop.f32.mrf.mxu1 }
 0x1c9   : > { %932 = vst [vmem:[%s1516_s28 + $0x18] sm:$0xff] %v878_v55  ;;  %v870_v57 = vadd.f32 %v1097_v50, %v869_v56 }
 0x1cb   : > { %930 = vst [vmem:[%s1516_s28 + $0x8] sm:$0xff] %v870_v57 }
 0x1d2   : > { %v1211_v58 = vpop.f32.mrf.mxu1 }
 0x1d3   : > { %v891_v59 = vadd.f32 %v1211_v58, %v1097_v50 }
 0x1d4   : > { %v882_v60 = vpop.f32.mrf.mxu1 }
 0x1d5   : > { %935 = vst [vmem:[%s1516_s28 + $0x30] sm:$0xff] %v891_v59  ;;  %v883_v61 = vadd.f32 %v1097_v50, %v882_v60 }
 0x1d6   : > { %v1212_v62 = vpop.f32.mrf.mxu1 }
 0x1d7   : > { %933 = vst [vmem:[%s1516_s28 + $0x20] sm:$0xff] %v883_v61  ;;  %v894_v63 = vadd.f32 %v1212_v62, %v1097_v50 }
 0x1d8   : > { %v885_v0 = vpop.f32.mrf.mxu1 }
 0x1d9   : > { %936 = vst [vmem:[%s1516_s28 + $0x38] sm:$0xff] %v894_v63  ;;  %v886_v1 = vadd.f32 %v1097_v50, %v885_v0 }
 0x1db   : > { %934 = vst [vmem:[%s1516_s28 + $0x28] sm:$0xff] %v886_v1 }
 0x1e2   : > { %v1215_v2 = vpop.f32.mrf.mxu1 }
 0x1e3   : > { %v907_v3 = vadd.f32 %v1215_v2, %v1097_v50 }
 0x1e4   : > { %v898_v4 = vpop.f32.mrf.mxu1 }
 0x1e5   : > { %939 = vst [vmem:[%s1516_s28 + $0x50] sm:$0xff] %v907_v3  ;;  %v899_v5 = vadd.f32 %v1097_v50, %v898_v4 }
 0x1e6   : > { %v1216_v6 = vpop.f32.mrf.mxu1 }
 0x1e7   : > { %937 = vst [vmem:[%s1516_s28 + $0x40] sm:$0xff] %v899_v5  ;;  %v910_v7 = vadd.f32 %v1216_v6, %v1097_v50 }
 0x1e8   : > { %v901_v8 = vpop.f32.mrf.mxu1 }
 0x1e9   : > { %940 = vst [vmem:[%s1516_s28 + $0x58] sm:$0xff] %v910_v7  ;;  %v902_v9 = vadd.f32 %v1097_v50, %v901_v8 }
 0x1eb   : > { %938 = vst [vmem:[%s1516_s28 + $0x48] sm:$0xff] %v902_v9 }
 0x1f2   : > { %v1219_v10 = vpop.f32.mrf.mxu1 }
 0x1f3   : > { %v923_v11 = vadd.f32 %v1219_v10, %v1097_v50 }
 0x1f4   : > { %v914_v12 = vpop.f32.mrf.mxu1 }
 0x1f5   : > { %943 = vst [vmem:[%s1516_s28 + $0x70] sm:$0xff] %v923_v11  ;;  %v915_v13 = vadd.f32 %v1097_v50, %v914_v12 }
 0x1f6   : > { %v1220_v14 = vpop.f32.mrf.mxu1 }
 0x1f7   : > { %941 = vst [vmem:[%s1516_s28 + $0x60] sm:$0xff] %v915_v13  ;;  %v926_v15 = vadd.f32 %v1220_v14, %v1097_v50 }
 0x1f8   : > { %v917_v16 = vpop.f32.mrf.mxu1 }
 0x1f9   : > { %944 = vst [vmem:[%s1516_s28 + $0x78] sm:$0xff] %v926_v15  ;;  %v918_v17 = vadd.f32 %v1097_v50, %v917_v16 }
 0x1fb   : > { %942 = vst [vmem:[%s1516_s28 + $0x68] sm:$0xff] %v918_v17 }
 0x1fc PF: > { %s17_s23 = sadd.s32 1, %s1315_s23   ;;  %s1550_s21 = smov %s1311_s22 }
 0x1fd   : > { %p14_p5 = scmp.ge.s32.totalorder %s17_s23, 4   ;;  %s1551_s22 = smov %s1553_s24 }
 0x1ff   :  { %16 = sbr.rel (!%p14_p5) target bundleno = 2 (0x2), region = 91 }

</bundles_post_ra>
